<compile_context>
chip_gen: v6e
topology: v6e:2x2x1
jax: 0.10.0
libtpu: 0.0.40
codegen_flags: <defaults>
</compile_context>

<pallas_src>
import functools

import jax
import jax.numpy as jnp
from jax.experimental import pallas as pl
from jax.experimental.pallas import tpu as pltpu

N_CLASSES = 10
N_INTERP = 9
Z_DIM = 16
HIDDEN = 32
IMG_C, IMG_H, IMG_W = 1, 8, 8
OUT_DIM = IMG_C * IMG_H * IMG_W          # 64

LANE = 128                               # lane-dense width of the parameter slab / output
PAR_HDR = Z_DIM + LANE                   # param slab: rows [0,16)=w1, rows [16,144)=w2
MAX_PAIRS = Z_DIM // 2                   # dyn-slab lane width (Z_DIM) limits pair batch to 8

_VMEM = pltpu.MemorySpace.VMEM


def _round_up(x, m):
    return ((x + m - 1) // m) * m


# ----------------------------------------------------------------------------
# Fused kernel: latent mixing + generator MLP.  Single invocation, no grid.
#   x = C @ [lat1; lat2]          (interp + pair-selection folded into C)
#   h = relu(x @ w1 + b1_rows)    (per-pair label already folded into b1_rows)
#   o = sigmoid(h @ w2 + b2)
# Padding rows (>= m_valid) have zero mixing coefficients and zero b1 rows; they
# produce sigmoid(b2) and are sliced off in the wrapper.  No cross-row reduction
# exists in the kernel, so they cannot contaminate valid rows.
# ----------------------------------------------------------------------------
def _interp_gen_kernel(dyn_ref, par_ref, o_ref, *, m_rows):
    # dyn_ref: (m_rows + Z_DIM, Z_DIM)   rows [0, m_rows): mixing matrix C
    #                                    rows [m_rows, m_rows+Z_DIM): [lat1; lat2; 0...]
    # par_ref: (PAR_HDR + m_rows + 8, LANE)
    c = dyn_ref[0:m_rows, :]                                   # (M, Z)
    lat = dyn_ref[m_rows:m_rows + Z_DIM, :]                    # (Z, Z)
    x = jnp.dot(c, lat, preferred_element_type=jnp.float32)    # (M, Z) interpolated latents

    w1 = par_ref[0:Z_DIM, :]                                   # (Z, LANE)   valid cols [:HIDDEN]
    w2 = par_ref[Z_DIM:PAR_HDR, :]                             # (LANE,LANE) valid [:HIDDEN,:OUT_DIM]
    b1 = par_ref[PAR_HDR:PAR_HDR + m_rows, :]                  # (M, LANE)   per-row bias (label folded)
    b2 = par_ref[PAR_HDR + m_rows:PAR_HDR + m_rows + 1, :]     # (1, LANE)

    h = jnp.maximum(jnp.dot(x, w1, preferred_element_type=jnp.float32) + b1, 0.0)
    y = jnp.dot(h, w2, preferred_element_type=jnp.float32) + b2
    o_ref[...] = 1.0 / (1.0 + jnp.exp(-y))                     # sigmoid (exp on EUP)


def _fused_call(dyn, par, m_rows):
    return pl.pallas_call(
        functools.partial(_interp_gen_kernel, m_rows=m_rows),
        out_shape=jax.ShapeDtypeStruct((m_rows, LANE), jnp.float32),
        in_specs=[pl.BlockSpec(memory_space=_VMEM)] * 2,
        out_specs=pl.BlockSpec(memory_space=_VMEM),
    )(dyn, par)


# ----------------------------------------------------------------------------
# Parameter prep (once per (params, labels, mode)): fold one-hot labels into
# per-row first-layer bias rows and pack everything into ONE lane-dense slab.
# ----------------------------------------------------------------------------
def init_generator_params(key):
    k1, k2 = jax.random.split(key)
    in_dim = Z_DIM + N_CLASSES
    w1 = jax.random.normal(k1, (in_dim, HIDDEN), jnp.float32) * 0.1
    b1 = jnp.zeros((1, HIDDEN), jnp.float32)
    w2 = jax.random.normal(k2, (HIDDEN, OUT_DIM), jnp.float32) * 0.1
    b2 = jnp.zeros((1, OUT_DIM), jnp.float32)
    return (w1, b1, w2, b2)


def prepare_generator_params(params, labels, interp):
    """one_hot @ w1[Z_DIM:] is a row-select, so the kernel never sees the one-hot
    labels nor the unaligned K=26 weight; the bias is pre-broadcast to per-row."""
    w1, b1, w2, b2 = params
    labels = [int(l) for l in labels]
    batch = len(labels)
    if not 1 <= batch <= MAX_PAIRS:
        raise ValueError(f"number of pairs must be in [1, {MAX_PAIRS}], got {batch}")
    rpp = 2 * N_INTERP if interp == "both" else N_INTERP       # rows per pair
    m_valid = batch * rpp
    m_rows = _round_up(m_valid, 8)

    lab = jnp.asarray(labels, jnp.int32)
    b1_eff = b1.reshape(1, HIDDEN) + w1[Z_DIM + lab]           # (B, HIDDEN)
    b1_rows = jnp.repeat(b1_eff, rpp, axis=0)                  # (m_valid, HIDDEN)

    par = jnp.zeros((PAR_HDR + m_rows + 8, LANE), jnp.float32)
    par = par.at[:Z_DIM, :HIDDEN].set(w1[:Z_DIM])
    par = par.at[Z_DIM:Z_DIM + HIDDEN, :OUT_DIM].set(w2)
    par = par.at[PAR_HDR:PAR_HDR + m_valid, :HIDDEN].set(b1_rows)
    par = par.at[PAR_HDR + m_rows, :OUT_DIM].set(b2.reshape(OUT_DIM))
    return par, (batch, rpp, m_valid, m_rows)


# ----------------------------------------------------------------------------
# Per-call dynamic slab: interpolation coefficients (incl. slerp trig on per-pair
# scalars) + raw latents, packed into one small array (one DMA).
# ----------------------------------------------------------------------------
def _build_dyn_slab(lat1, lat2, *, interp, batch, rpp, m_valid, m_rows):
    lat1 = lat1.reshape(batch, Z_DIM).astype(jnp.float32)
    lat2 = lat2.reshape(batch, Z_DIM).astype(jnp.float32)

    t = jnp.linspace(0.0, 1.0, N_INTERP, dtype=jnp.float32)[None, :]     # (1, 9)
    a_lin = jnp.broadcast_to(1.0 - t, (batch, N_INTERP))
    b_lin = jnp.broadcast_to(t, (batch, N_INTERP))

    if interp in ("slerp", "both"):
        n1 = jnp.sqrt(jnp.sum(lat1 * lat1, axis=-1, keepdims=True) + 1e-20)
        n2 = jnp.sqrt(jnp.sum(lat2 * lat2, axis=-1, keepdims=True) + 1e-20)
        cosom = jnp.clip(jnp.sum((lat1 / n1) * (lat2 / n2), axis=-1, keepdims=True),
                         -1.0, 1.0)                                       # (B, 1)
        omega = jnp.arccos(cosom)
        so = jnp.sin(omega)
        safe = jnp.abs(so) > 1e-6        # nearly (anti-)parallel: fall back to lerp
        inv_so = 1.0 / jnp.where(safe, so, 1.0)                           # exact division
        a_sl = jnp.where(safe, jnp.sin((1.0 - t) * omega) * inv_so, a_lin)
        b_sl = jnp.where(safe, jnp.sin(t * omega) * inv_so, b_lin)

    if interp == "linear":
        a, b = a_lin, b_lin
    elif interp == "slerp":
        a, b = a_sl, b_sl
    elif interp == "both":               # per pair: rows [0,9) linear, [9,18) slerp
        a = jnp.concatenate([a_lin, a_sl], axis=1)
        b = jnp.concatenate([b_lin, b_sl], axis=1)
    else:
        raise ValueError("Can only interpolate linearly or using slerp.")

    # Mixing matrix with the pair-selection one-hot folded in:
    #   x = C @ [lat1; lat2],  C[r, p] = a_r, C[r, batch + p] = b_r for rows of pair p.
    eye = jnp.eye(batch, dtype=jnp.float32)
    ca = a[:, :, None] * eye[:, None, :]                       # (B, rpp, B)
    cb = b[:, :, None] * eye[:, None, :]
    cmat = jnp.concatenate([ca, cb], axis=-1).reshape(m_valid, 2 * batch)

    dyn = jnp.zeros((m_rows + Z_DIM, Z_DIM), jnp.float32)
    dyn = dyn.at[:m_valid, :2 * batch].set(cmat)
    dyn = dyn.at[m_rows:m_rows + batch].set(lat1)
    dyn = dyn.at[m_rows + batch:m_rows + 2 * batch].set(lat2)
    return dyn


# ----------------------------------------------------------------------------
# Forward wrappers
# ----------------------------------------------------------------------------
def make_interpolator(params, labels, interp):
    """Jitted forward(lat1, lat2) for a fixed set of per-pair labels.

    lat1, lat2: (B, Z_DIM).  Returns (B, N_INTERP, C, H, W) images, or a
    (linear, slerp) tuple of those for interp='both' (both in one launch)."""
    par, (batch, rpp, m_valid, m_rows) = prepare_generator_params(params, labels, interp)

    @jax.jit
    def forward(lat1, lat2):
        dyn = _build_dyn_slab(lat1, lat2, interp=interp, batch=batch, rpp=rpp,
                              m_valid=m_valid, m_rows=m_rows)
        out = _fused_call(dyn, par, m_rows)                    # (m_rows, LANE)
        imgs = out[:m_valid, :OUT_DIM].reshape(batch, rpp, IMG_C, IMG_H, IMG_W)
        if interp == "both":
            return imgs[:, :N_INTERP], imgs[:, N_INTERP:]
        return imgs

    return forward


class Interpolate:
    """JAX/Pallas port of the PyTorch Interpolate module (component='latents').

    forward(latent1, latent2, label) -> (n_interp, 1, 8, 8) generated images.
    """
    # TODO(synk): component='classes' branch (interpolating one-hot labels with a
    # fixed noise vector) would reuse the same fused kernel; only 'latents' is wired.

    def __init__(self, params, interp, component="latents"):
        if component != "latents":
            raise NotImplementedError("only component='latents' is implemented")
        if interp not in ("linear", "slerp"):
            raise Exception("Can only interpolate linearly or using slerp.")
        self.params = params
        self.interp = interp
        self._fwd_cache = {}

    def forward(self, latent1, latent2, label):
        label = int(label)
        fwd = self._fwd_cache.get(label)
        if fwd is None:
            fwd = make_interpolator(self.params, [label], self.interp)
            self._fwd_cache[label] = fwd
        return fwd(latent1, latent2)[0]

    __call__ = forward


if __name__ == "__main__":
    key = jax.random.PRNGKey(0)
    k_lat1, k_lat2, k_params, k_b1, k_b2 = jax.random.split(key, 5)

    params = init_generator_params(k_params)
    w1, b1, w2, b2 = params

    # ---- plain-JAX reference (unfused, original 26-wide weights) ----
    def ref_generate(noise_rows, label):
        oh = jax.nn.one_hot(jnp.full((noise_rows.shape[0],), label), N_CLASSES,
                            dtype=jnp.float32)
        x = jnp.concatenate([noise_rows, oh], axis=1)
        h = jnp.maximum(x @ w1 + b1, 0.0)
        return jax.nn.sigmoid(h @ w2 + b2).reshape(-1, IMG_C, IMG_H, IMG_W)

    t_ref = jnp.linspace(0.0, 1.0, N_INTERP)[:, None]

    def ref_lerp(v1, v2):
        return v1 * (1.0 - t_ref) + v2 * t_ref

    def ref_slerp(v1, v2):
        cosom = jnp.clip(jnp.sum((v1 / jnp.linalg.norm(v1)) * (v2 / jnp.linalg.norm(v2))),
                         -1.0, 1.0)
        omega = jnp.arccos(cosom)
        so = jnp.sin(omega)
        return jnp.sin((1.0 - t_ref) * omega) / so * v1 + jnp.sin(t_ref * omega) / so * v2

    # Kernel elementwise math is exact f32 (no approx reciprocal); the tolerance only
    # covers MXU default-precision f32 matmul rounding differences vs. the XLA reference.
    TOL = 2e-3

    # ---- module-faithful single-pair path (Interpolate.forward, component='latents') ----
    latent1 = jax.random.normal(k_lat1, (1, Z_DIM), jnp.float32)
    latent2 = jax.random.normal(k_lat2, (1, Z_DIM), jnp.float32)
    label = 3
    fake_lin = Interpolate(params, "linear")(latent1, latent2, label)
    fake_sl = Interpolate(params, "slerp")(latent1, latent2, label)
    jax.block_until_ready((fake_lin, fake_sl))
    assert fake_lin.shape == (N_INTERP, IMG_C, IMG_H, IMG_W)
    assert fake_sl.shape == (N_INTERP, IMG_C, IMG_H, IMG_W)
    assert jnp.allclose(fake_lin, ref_generate(ref_lerp(latent1, latent2), label),
                        atol=TOL), "linear mismatch vs reference"
    assert jnp.allclose(fake_sl, ref_generate(ref_slerp(latent1, latent2), label),
                        atol=TOL), "slerp mismatch vs reference"

    # ---- batched path: 4 pairs, per-pair labels, linear AND slerp in ONE launch ----
    B = 4
    blat1 = jax.random.normal(k_b1, (B, Z_DIM), jnp.float32)
    blat2 = jax.random.normal(k_b2, (B, Z_DIM), jnp.float32)
    blabels = [0, 3, 5, 9]
    fwd_both = make_interpolator(params, blabels, "both")
    bfake_lin, bfake_sl = fwd_both(blat1, blat2)
    jax.block_until_ready((bfake_lin, bfake_sl))
    assert bfake_lin.shape == (B, N_INTERP, IMG_C, IMG_H, IMG_W)
    assert bfake_sl.shape == (B, N_INTERP, IMG_C, IMG_H, IMG_W)
    for p in range(B):
        v1, v2 = blat1[p:p + 1], blat2[p:p + 1]
        assert jnp.allclose(bfake_lin[p], ref_generate(ref_lerp(v1, v2), blabels[p]),
                            atol=TOL), f"batched linear mismatch, pair {p}"
        assert jnp.allclose(bfake_sl[p], ref_generate(ref_slerp(v1, v2), blabels[p]),
                            atol=TOL), f"batched slerp mismatch, pair {p}"

    print("KERNEL_OK")
</pallas_src>

<mosaic_0001>
module attributes {stable_mosaic.version = 11 : i64} {
  func.func @_interp_gen_kernel(%arg0: memref<32x16xf32, #tpu.memory_space<vmem>>, %arg1: memref<168x128xf32, #tpu.memory_space<vmem>>, %arg2: memref<16x128xf32, #tpu.memory_space<vmem>>) attributes {dimension_semantics = [], scalar_prefetch = 0 : i64, scratch_operands = 0 : i64, tpu.core_type = #tpu.core_type<tc>} {
    %c0 = arith.constant 0 : index
    %c0_0 = arith.constant 0 : index
    %0 = vector.load %arg0[%c0, %c0_0] : memref<32x16xf32, #tpu.memory_space<vmem>>, vector<16x16xf32>
    %c16 = arith.constant 16 : index
    %c0_1 = arith.constant 0 : index
    %1 = vector.load %arg0[%c16, %c0_1] : memref<32x16xf32, #tpu.memory_space<vmem>>, vector<16x16xf32>
    %cst = arith.constant dense<0.000000e+00> : vector<16x16xf32>
    %2 = tpu.matmul %0, %1, %cst {dimension_numbers = #tpu.dot_dimension_numbers<[1], [0], [0], [1], [0, 0, 1, 1], [], []>} : vector<16x16xf32>, vector<16x16xf32>, vector<16x16xf32> -> vector<16x16xf32>
    %c0_2 = arith.constant 0 : index
    %c0_3 = arith.constant 0 : index
    %3 = vector.load %arg1[%c0_2, %c0_3] : memref<168x128xf32, #tpu.memory_space<vmem>>, vector<16x128xf32>
    %c16_4 = arith.constant 16 : index
    %c0_5 = arith.constant 0 : index
    %4 = vector.load %arg1[%c16_4, %c0_5] : memref<168x128xf32, #tpu.memory_space<vmem>>, vector<128x128xf32>
    %c144 = arith.constant 144 : index
    %c0_6 = arith.constant 0 : index
    %5 = vector.load %arg1[%c144, %c0_6] : memref<168x128xf32, #tpu.memory_space<vmem>>, vector<16x128xf32>
    %c160 = arith.constant 160 : index
    %c0_7 = arith.constant 0 : index
    %6 = vector.load %arg1[%c160, %c0_7] : memref<168x128xf32, #tpu.memory_space<vmem>>, vector<1x128xf32>
    %cst_8 = arith.constant dense<0.000000e+00> : vector<16x128xf32>
    %7 = tpu.matmul %2, %3, %cst_8 {dimension_numbers = #tpu.dot_dimension_numbers<[1], [0], [0], [1], [0, 0, 1, 1], [], []>} : vector<16x16xf32>, vector<16x128xf32>, vector<16x128xf32> -> vector<16x128xf32>
    %8 = arith.addf %7, %5 : vector<16x128xf32>
    %cst_9 = arith.constant 0.000000e+00 : f32
    %9 = vector.broadcast %cst_9 : f32 to vector<16x128xf32>
    %10 = arith.maximumf %8, %9 : vector<16x128xf32>
    %cst_10 = arith.constant dense<0.000000e+00> : vector<16x128xf32>
    %11 = tpu.matmul %10, %4, %cst_10 {dimension_numbers = #tpu.dot_dimension_numbers<[1], [0], [0], [1], [0, 0, 1, 1], [], []>} : vector<16x128xf32>, vector<128x128xf32>, vector<16x128xf32> -> vector<16x128xf32>
    %12 = vector.broadcast %6 : vector<1x128xf32> to vector<16x128xf32>
    %13 = arith.addf %11, %12 : vector<16x128xf32>
    %cst_11 = arith.constant 0.000000e+00 : f32
    %14 = vector.broadcast %cst_11 : f32 to vector<16x128xf32>
    %15 = arith.subf %14, %13 : vector<16x128xf32>
    %16 = math.exp %15 : vector<16x128xf32>
    %cst_12 = arith.constant 1.000000e+00 : f32
    %17 = vector.broadcast %cst_12 : f32 to vector<16x128xf32>
    %18 = arith.addf %17, %16 : vector<16x128xf32>
    %cst_13 = arith.constant 1.000000e+00 : f32
    %19 = vector.broadcast %cst_13 : f32 to vector<16x128xf32>
    %20 = arith.divf %19, %18 : vector<16x128xf32>
    %c0_14 = arith.constant 0 : index
    %c0_15 = arith.constant 0 : index
    %21 = vector.load %arg2[%c0_14, %c0_15] : memref<16x128xf32, #tpu.memory_space<vmem>>, vector<16x128xf32>
    tpu.vector_store %arg2[%c0_14, %c0_15], %20 {strides = array<i32>} : memref<16x128xf32, #tpu.memory_space<vmem>>, vector<16x128xf32>,
    return
  }
}

</mosaic_0001>

<bundles_post_ra>
// kernel: forward.1
= control target key start
LH: loop header
LB: loop body
LE: loop exit
PB: predicated region body
PF: predicated region fallthrough
CT: control target
= control target key end

     0   :  { %7 = vsyncpa [#allocation3], 0  ;;  %s426_s9 = smov [#allocation2]   ;;  %s469_s0 = inlined_call_operand.vmem [shape: f32[32,16], index: 0, kind: input, shape index: {}]   ;;  %s470_s1 = inlined_call_operand.hbm [shape: f32[168,128], index: 1, kind: input, shape index: {}]   ;;  %s471_s2 = inlined_call_operand.vmem [shape: f32[16,128], index: 2, kind: output, shape index: {}]  }
   0x1   :  { %s15_s10 = sshll.u32 %s426_s9, 4  ;;  %s16_s10 = int_to_ptr.vmem [resolvable:$true] %s15_s10 }
   0x2   :  { %s412_s11 = scalar_lea.vmem %s16_s10, 2688  ;;  %p417_p1 = scmp.lt.s32.totalorder %s16_s10, %s16_s10 }
   0x3   :  { %p413_p0 = scmp.ne.s32.totalorder %s16_s10, %s412_s11  ;;  %p418_p2 = scmp.lt.s32.totalorder %s412_s11, %s412_s11 }
   0x5   :  { %p419_p3 = por %p418_p2, %p417_p1 }
   0x7   :  { %p420_p4 = pnand %p419_p3, %p413_p0 }
   0x9   :  { %423 = shalt.err (!%p420_p4)
}
   0xa   :  { %s427_s12 = smov 128   ;;  %s428_s13 = smov 8  }
   0xb   :  { %21 = dma.hbm_to_vmem [thread:$0]  %s470_s1, 2688, %s16_s10, [#allocation3], %s427_s12, %s427_s12, %s428_s13  }
   0xc   :  { %424 = dma.done.wait [#allocation3], 2688  }
   0xd   :  { %425 = vsyncadd [#allocation3], 4294964608  ;;  %vm29_vm0 = vcmask 130048   ;;  %v28_v0 = vld [vmem:[%s469_s0 + $0x18] sm:$0xff]  ;;  %v27_v1 = vld [vmem:[%s469_s0 + $0x10] sm:$0xff] }
   0xe   :  { %v25_v2 = vld [vmem:[%s469_s0] sm:$0xff]  ;;  %344 = vmatprep.subr.mxu1 %v28_v0  ;;  %v26_v3 = vld [vmem:[%s469_s0 + $0x8] sm:$0xff]  ;;  %v126_v8 = vld [vmem:[#allocation2 + $0x78] sm:$0xff] }
   0xf   :  { %348 = vmatprep.mubr.msk.f32.mxu1 %vm29_vm0, %v25_v2  ;;  %345 = vmatpush3.msra.mxu1 %v28_v0  ;;  %v112_v4 = vld [vmem:[#allocation2 + $0x8] sm:$0xff]  ;;  %v111_v5 = vld [vmem:[#allocation2] sm:$0xff]  ;;  %v125_v9 = vld [vmem:[#allocation2 + $0x70] sm:$0xff] }
  0x10   :  { %346 = vmatprep.subr.mxu1 %v27_v1  ;;  %v128_v6 = vld [vmem:[#allocation2 + $0x88] sm:$0xff]  ;;  %v127_v7 = vld [vmem:[#allocation2 + $0x80] sm:$0xff]  ;;  %v122_v12 = vld [vmem:[#allocation2 + $0x58] sm:$0xff] }
  0x11   :  { %347 = vmatpush3.msra.mxu1 %v27_v1  ;;  %358 = vmatprep.subr.mxu0 %v128_v6  ;;  %v124_v10 = vld [vmem:[#allocation2 + $0x68] sm:$0xff]  ;;  %v123_v11 = vld [vmem:[#allocation2 + $0x60] sm:$0xff]  ;;  %v121_v13 = vld [vmem:[#allocation2 + $0x50] sm:$0xff] }
  0x12   :  { %349 = vmatmul.mubr.msk.f32.vlgmr.msra.gmra.mxu1 %vm29_vm0, %v26_v3  ;;  %351 = vmatprep.subr.mxu1 %v112_v4  ;;  %v120_v14 = vld [vmem:[#allocation2 + $0x48] sm:$0xff]  ;;  %v119_v15 = vld [vmem:[#allocation2 + $0x40] sm:$0xff]  ;;  %v118_v16 = vld [vmem:[#allocation2 + $0x38] sm:$0xff] }
  0x13   :  { %352 = vmatpush3.msra.mxu1 %v112_v4  ;;  %359 = vmatpush3.msra.mxu0 %v128_v6  ;;  %v117_v17 = vld [vmem:[#allocation2 + $0x30] sm:$0xff]  ;;  %v116_v20 = vld [vmem:[#allocation2 + $0x28] sm:$0xff]  ;;  %v115_v21 = vld [vmem:[#allocation2 + $0x20] sm:$0xff] }
  0x14   :  { %353 = vmatprep.subr.mxu1 %v111_v5  ;;  %360 = vmatprep.subr.mxu0 %v127_v7  ;;  %v114_v22 = vld [vmem:[#allocation2 + $0x18] sm:$0xff]  ;;  %v113_v23 = vld [vmem:[#allocation2 + $0x10] sm:$0xff]  ;;  %v317_v32 = vld [vmem:[#allocation2 + $0xa0] ss:$0 sm:$0xff] }
  0x15   :  { %354 = vmatpush3.msra.mxu1 %v111_v5  ;;  %361 = vmatpush3.msra.mxu0 %v127_v7  ;;  %v130_v24 = vld [vmem:[#allocation2 + $0x98] sm:$0xff]  ;;  %v129_v26 = vld [vmem:[#allocation2 + $0x90] sm:$0xff] }
  0x16   :  { %362 = vmatprep.subr.mxu0 %v126_v8 }
  0x17   :  { %363 = vmatpush3.msra.mxu0 %v126_v8 }
  0x18   :  { %364 = vmatprep.subr.mxu0 %v125_v9 }
  0x19   :  { %365 = vmatpush3.msra.mxu0 %v125_v9 }
  0x1a   :  { %366 = vmatprep.subr.mxu0 %v124_v10 }
  0x1b   :  { %367 = vmatpush3.msra.mxu0 %v124_v10 }
  0x1c   :  { %368 = vmatprep.subr.mxu0 %v123_v11 }
  0x1d   :  { %369 = vmatpush3.msra.mxu0 %v123_v11 }
  0x1e   :  { %370 = vmatprep.subr.mxu0 %v122_v12 }
  0x1f   :  { %371 = vmatpush3.msra.mxu0 %v122_v12 }
  0x20   :  { %372 = vmatprep.subr.mxu0 %v121_v13 }
  0x21   :  { %373 = vmatpush3.msra.mxu0 %v121_v13 }
  0x22   :  { %374 = vmatprep.subr.mxu0 %v120_v14 }
  0x23   :  { %375 = vmatpush3.msra.mxu0 %v120_v14 }
  0x24   :  { %376 = vmatprep.subr.mxu0 %v119_v15 }
  0x25   :  { %377 = vmatpush3.msra.mxu0 %v119_v15 }
  0x26   :  { %378 = vmatprep.subr.mxu0 %v118_v16 }
  0x27   :  { %379 = vmatpush3.msra.mxu0 %v118_v16 }
  0x28   :  { %380 = vmatprep.subr.mxu0 %v117_v17 }
  0x29   :  { %381 = vmatpush3.msra.mxu0 %v117_v17 }
  0x2a   :  { %382 = vmatprep.subr.mxu0 %v116_v20 }
  0x2b   :  { %383 = vmatpush3.msra.mxu0 %v116_v20 }
  0x2c   :  { %384 = vmatprep.subr.mxu0 %v115_v21 }
  0x2d   :  { %385 = vmatpush3.msra.mxu0 %v115_v21 }
  0x2e   :  { %386 = vmatprep.subr.mxu0 %v114_v22 }
  0x2f   :  { %387 = vmatpush3.msra.mxu0 %v114_v22 }
  0x30   :  { %388 = vmatprep.subr.mxu0 %v113_v23 }
  0x31   :  { %389 = vmatpush3.msra.mxu0 %v113_v23 }
  0xd2   :  { %v350_v18 = vpop.f32.mrf.mxu1 }
  0xd4   :  { %v102_v19 = vpop.f32.mrf.mxu1 }
  0xd5   :  { %355 = vmatprep.mubr.msk.f32.mxu1 %vm29_vm0, %v102_v19 }
  0xd6   :  { %356 = vmatmul.mubr.msk.f32.vlgmr.msra.gmra.mxu1 %vm29_vm0, %v350_v18 }
 0x196   :  { %v357_v25 = vpop.f32.mrf.mxu1 }
 0x197   :  { %v210_v27 = vadd.f32 %v357_v25, %v130_v24 }
 0x198   :  { %v204_v28 = vpop.f32.mrf.mxu1 }
 0x199   :  { %v205_v29 = vadd.f32 %v204_v28, %v129_v26  ;;  %v214_v31 = vmax.f32 %v210_v27, 0.0 }
 0x19b   :  { %v213_v30 = vmax.f32 %v205_v29, 0.0 }
 0x19d   :  { %390 = vmatprep.mubr.f32.mxu0 %v213_v30 }
 0x19e   :  { %391 = vmatmul.mubr.f32.vlgmr.msra.gmra.mxu0 %v214_v31 }
 0x25e   :  { %v392_v33 = vpop.f32.mrf.mxu0 }
 0x25f   :  { %v291_v34 = vadd.f32 %v392_v33, %v317_v32 }
 0x260   :  { %v285_v35 = vpop.f32.mrf.mxu0 }
 0x261   :  { %v295_v36 = vsub.f32 0.0, %v291_v34  ;;  %v286_v37 = vadd.f32 %v317_v32, %v285_v35 }
 0x263   :  { %v298_v38 = vmul.f32 1.442695, %v295_v36  ;;  %v294_v39 = vsub.f32 0.0, %v286_v37 }
 0x265   :  { %396 = vpow2.f32 %v298_v38  ;;  %v296_v40 = vmul.f32 1.442695, %v294_v39 }
 0x267   :  { %398 = vpow2.f32 %v296_v40 }
 0x272   :  { %v397_v41 = vpop.eup %396 }
 0x273   :  { %v301_v42 = vadd.f32 1.0, %v397_v41 }
 0x274   :  { %v399_v43 = vpop.eup %398 }
 0x275   :  { %400 = vrcp.f32 %v301_v42  ;;  %v300_v44 = vadd.f32 1.0, %v399_v43 }
 0x277   :  { %402 = vrcp.f32 %v300_v44 }
 0x282   :  { %v401_v45 = vpop.eup %400 }
 0x283   :  { %307 = vst [vmem:[%s471_s2 + $0x8] sm:$0xff] %v401_v45 }
 0x284   :  { %v403_v46 = vpop.eup %402 }
 0x285   :  { %306 = vst [vmem:[%s471_s2] sm:$0xff] %v403_v46 }
 0x286   :  { %312 = vsyncpa [#allocation3], 1 }

</bundles_post_ra>
